<compile_context>
chip_gen: v7x
topology: tpu7x:2x2x1
jax: 0.10.0
libtpu: 0.0.40
codegen_flags: <defaults>
</compile_context>

<pallas_src>
import jax
import jax.numpy as jnp
from jax import lax
from jax.experimental import pallas as pl
from jax.experimental.pallas import tpu as pltpu

BN_EPS = 1e-5
LEAKY_SLOPE = 0.01


def _leaky_relu(h):
    # max(h, a*h) == leaky_relu for 0 < a < 1; 2 VALU ops instead of 3.
    return jnp.maximum(h, LEAKY_SLOPE * h)


def _binary_cls_kernel(x_ref,
                       w1_ref, b1_ref,
                       w2_ref, b2_ref,
                       w3_ref, b3_ref,
                       wr_ref, br_ref,
                       w4_ref, b4_ref,
                       o_ref):
    # Everything is in transposed orientation: activations are (features, TILE_B)
    # so the batch (a multiple of 128) sits on the lane axis.
    x = x_ref[...]                            # (IN, TILE_B), bf16
    cdt = x.dtype                             # MXU input dtype (bf16)

    # fc1 (+ folded bn1) -> leaky_relu          (dropout1 == identity in eval)
    h = jnp.dot(w1_ref[...], x, preferred_element_type=jnp.float32) + b1_ref[...]
    h = _leaky_relu(h)                        # (H1, TILE_B) f32

    # fc2 (+ folded bn2) -> leaky_relu
    h = jnp.dot(w2_ref[...], h.astype(cdt),
                preferred_element_type=jnp.float32) + b2_ref[...]
    h = _leaky_relu(h)                        # (H2, TILE_B) f32

    # fc3 (+ folded bn3) -> leaky_relu
    h = jnp.dot(w3_ref[...], h.astype(cdt),
                preferred_element_type=jnp.float32) + b3_ref[...]
    h = _leaky_relu(h)                        # (H3, TILE_B) f32

    # residual branch from the original input
    h = h + jnp.dot(wr_ref[...], x, preferred_element_type=jnp.float32) + br_ref[...]

    # fc4 -> (OUT, TILE_B) logits, lane-dense store.
    logits = jnp.dot(w4_ref[...], h.astype(cdt),
                     preferred_element_type=jnp.float32) + b4_ref[...]

    # exact sigmoid: exp on the EUP, exact divide (logits are tiny: (OUT, TILE_B))
    o_ref[...] = (1.0 / (1.0 + jnp.exp(-logits))).astype(o_ref.dtype)


def binary_classification_forward(x, params, *, tile_b=8192):
    """x: [B, input_size] float32.  params: dict from fold_params()."""
    B, in_size = x.shape
    out_size, h3 = params["w4t"].shape
    h1 = params["w1t"].shape[0]
    h2 = params["w2t"].shape[0]
    cdt = params["w1t"].dtype

    weight_args = [params[k] for k in
                   ("w1t", "b1c", "w2t", "b2c", "w3t", "b3c",
                    "wrt", "brc", "w4t", "b4c")]
    weight_bytes = sum(int(a.size) * a.dtype.itemsize for a in weight_args)

    # --- batch-tile sizing against a conservative scoped-VMEM budget --------
    # bytes of VMEM held per batch column at peak (generous, lane/sublane-padded):
    #   x bf16 double-buffered, bf16 output double-buffered, f32 intermediates
    #   + bf16 MXU re-casts + residual/logits slack.
    bpc = (2 * 2 * in_size
           + 2 * 2 * max(8, out_size)
           + 6 * (h1 + h2 + h3)
           + 8 * h3)
    vmem_cap = max(128, (((12 << 20) // (2 * bpc)) // 128) * 128)  # 2x headroom under 12 MiB (fits v5e's 16 MiB default)
    b_lane = pl.cdiv(B, 128) * 128

    tile_b = max(128, (min(tile_b, vmem_cap) // 128) * 128)
    if tile_b >= b_lane:
        # Keep >=2 grid steps whenever the batch allows it so both v7x
        # TensorCores get work (costs ~0.35us/step on single-TC chips).
        tile_b = max(128, ((b_lane // 2) // 128) * 128) if b_lane >= 256 else b_lane
    n_tiles = pl.cdiv(B, tile_b)
    b_pad = n_tiles * tile_b

    # host-side: cast to bf16, transpose to (IN, B), pad the batch (lane) axis.
    xt = x.astype(cdt).T
    if b_pad != B:
        xt = jnp.pad(xt, ((0, 0), (0, b_pad - B)))

    def _resident(a):
        # whole array in one block; same block index every grid step so it is
        # DMA'd once and stays resident in VMEM across the batch grid.
        return pl.BlockSpec(a.shape, lambda i: (0, 0))

    flops = 2 * b_pad * (in_size * h1 + h1 * h2 + h2 * h3
                         + in_size * h3 + h3 * out_size)
    bytes_accessed = (xt.size * xt.dtype.itemsize          # bf16 x
                      + b_pad * out_size * 2               # bf16 output
                      + weight_bytes)
    # explicit scoped-VMEM limit: 2x the estimated peak, never below the
    # generation defaults we rely on, never near v7x's 64 MiB physical ceiling.
    vmem_limit = int(min(max(2 * tile_b * bpc + weight_bytes, 32 << 20), 56 << 20))

    out_t = pl.pallas_call(
        _binary_cls_kernel,
        out_shape=jax.ShapeDtypeStruct((out_size, b_pad), jnp.bfloat16),
        grid=(n_tiles,),
        in_specs=[pl.BlockSpec((in_size, tile_b), lambda i: (0, i))]
                 + [_resident(a) for a in weight_args],
        out_specs=pl.BlockSpec((out_size, tile_b), lambda i: (0, i)),
        compiler_params=pltpu.CompilerParams(
            dimension_semantics=("parallel",),
            vmem_limit_bytes=vmem_limit),
        cost_estimate=pl.CostEstimate(
            flops=flops,
            transcendentals=b_pad * out_size,
            bytes_accessed=bytes_accessed),
    )(xt, *weight_args)

    # (OUT, B_pad) -> (B, OUT); for OUT=1 this transpose is just a reshape.
    return out_t[:, :B].T.astype(jnp.float32)


def init_raw_params(key, input_size, hidden_size, output_size):
    """PyTorch-default init: Linear ~ U(+/-1/sqrt(fan_in)); BatchNorm fresh
    (weight=1, bias=0, running_mean=0, running_var=1)."""
    h2, h4 = hidden_size // 2, hidden_size // 4

    def linear(k, fan_in, fan_out):
        kw, kb = jax.random.split(k)
        bound = 1.0 / jnp.sqrt(fan_in)
        # stored as [in, out] (x @ W orientation); fold_params transposes.
        w = jax.random.uniform(kw, (fan_in, fan_out), jnp.float32, -bound, bound)
        b = jax.random.uniform(kb, (1, fan_out), jnp.float32, -bound, bound)
        return w, b

    def bn(n):
        return (jnp.ones((1, n), jnp.float32),   # gamma
                jnp.zeros((1, n), jnp.float32),  # beta
                jnp.zeros((1, n), jnp.float32),  # running mean
                jnp.ones((1, n), jnp.float32))   # running var

    k1, k2, k3, k4, kr = jax.random.split(key, 5)
    p = {}
    p["w1"], p["b1"] = linear(k1, input_size, hidden_size)
    p["g1"], p["be1"], p["m1"], p["v1"] = bn(hidden_size)
    p["w2"], p["b2"] = linear(k2, hidden_size, h2)
    p["g2"], p["be2"], p["m2"], p["v2"] = bn(h2)
    p["w3"], p["b3"] = linear(k3, h2, h4)
    p["g3"], p["be3"], p["m3"], p["v3"] = bn(h4)
    p["wr"], p["br"] = linear(kr, input_size, h4)
    p["w4"], p["b4"] = linear(k4, h4, output_size)
    return p


def fold_params(raw, compute_dtype=jnp.bfloat16):
    """One-time host-side constant fold + transpose for the (features, TILE_B)
    kernel orientation:
       W' = (W * diag(g * rsqrt(v+eps))).T   -> (out, in), compute_dtype
       b' = ((b - m) * g * rsqrt(v+eps) + beta).T -> (out, 1), f32
    MXU weight operands are cast to compute_dtype; biases stay f32 (added to
    the f32 accumulators)."""
    def fold_t(w, b, g, be, m, v):
        scale = g * lax.rsqrt(v + BN_EPS)                      # (1, out)
        wt = (w * scale).T.astype(compute_dtype)               # (out, in)
        bc = ((b - m) * scale + be).T                          # (out, 1)
        return wt, bc

    p = {}
    p["w1t"], p["b1c"] = fold_t(raw["w1"], raw["b1"], raw["g1"], raw["be1"], raw["m1"], raw["v1"])
    p["w2t"], p["b2c"] = fold_t(raw["w2"], raw["b2"], raw["g2"], raw["be2"], raw["m2"], raw["v2"])
    p["w3t"], p["b3c"] = fold_t(raw["w3"], raw["b3"], raw["g3"], raw["be3"], raw["m3"], raw["v3"])
    p["wrt"] = raw["wr"].T.astype(compute_dtype)               # (h4, in)
    p["brc"] = raw["br"].T                                     # (h4, 1)
    p["w4t"] = raw["w4"].T.astype(compute_dtype)               # (out, h4)
    p["b4c"] = raw["b4"].T                                     # (out, 1)
    return p


def reference_forward_folded(x, p):
    """Pure-JAX reference using the SAME folded bf16 params / orientation."""
    cdt = p["w1t"].dtype
    xt = x.astype(cdt).T
    h = jnp.dot(p["w1t"], xt, preferred_element_type=jnp.float32) + p["b1c"]
    h = _leaky_relu(h)
    h = jnp.dot(p["w2t"], h.astype(cdt), preferred_element_type=jnp.float32) + p["b2c"]
    h = _leaky_relu(h)
    h = jnp.dot(p["w3t"], h.astype(cdt), preferred_element_type=jnp.float32) + p["b3c"]
    h = _leaky_relu(h)
    h = h + jnp.dot(p["wrt"], xt, preferred_element_type=jnp.float32) + p["brc"]
    logits = jnp.dot(p["w4t"], h.astype(cdt), preferred_element_type=jnp.float32) + p["b4c"]
    return (1.0 / (1.0 + jnp.exp(-logits))).T


def reference_forward_raw(x, p):
    """Full-f32 reference matching the original PyTorch module (eval mode)."""
    def bn(h, g, be, m, v):
        return (h - m) * lax.rsqrt(v + BN_EPS) * g + be
    h = x @ p["w1"] + p["b1"]
    h = _leaky_relu(bn(h, p["g1"], p["be1"], p["m1"], p["v1"]))
    h = h @ p["w2"] + p["b2"]
    h = _leaky_relu(bn(h, p["g2"], p["be2"], p["m2"], p["v2"]))
    h = h @ p["w3"] + p["b3"]
    h = _leaky_relu(bn(h, p["g3"], p["be3"], p["m3"], p["v3"]))
    h = h + (x @ p["wr"] + p["br"])
    return jax.nn.sigmoid(h @ p["w4"] + p["b4"])


if __name__ == "__main__":
    # small shapes consistent with the module; batch chosen so the grid has
    # multiple tiles and exercises the padding path (300 -> 3 tiles of 128).
    B, INPUT, HIDDEN, OUTPUT = 300, 32, 32, 1

    key = jax.random.PRNGKey(0)
    kx, kp = jax.random.split(key)
    x = jax.random.normal(kx, (B, INPUT), jnp.float32)

    raw = init_raw_params(kp, INPUT, HIDDEN, OUTPUT)
    params = fold_params(raw)

    out = binary_classification_forward(x, params)
    out = jax.block_until_ready(out)
    assert out.shape == (B, OUTPUT)

    # check vs a pure-JAX reference with identical folded bf16 params
    # (tolerance covers bf16 accumulation order + bf16 output rounding).
    ref = reference_forward_folded(x, params)
    assert jnp.allclose(out, ref, atol=1e-2, rtol=0.0), \
        float(jnp.max(jnp.abs(out - ref)))

    # loose semantics check vs the exact f32 PyTorch-equivalent math.
    ref32 = reference_forward_raw(x, raw)
    assert jnp.allclose(out, ref32, atol=5e-2, rtol=0.0), \
        float(jnp.max(jnp.abs(out - ref32)))

    print("KERNEL_OK")
</pallas_src>

<mosaic_0001>
module attributes {stable_mosaic.version = 11 : i64} {
  func.func @_binary_cls_kernel(%arg0: i32, %arg1: memref<32x128xbf16, #tpu.memory_space<vmem>>, %arg2: memref<32x32xbf16, #tpu.memory_space<vmem>>, %arg3: memref<32x1xf32, #tpu.memory_space<vmem>>, %arg4: memref<16x32xbf16, #tpu.memory_space<vmem>>, %arg5: memref<16x1xf32, #tpu.memory_space<vmem>>, %arg6: memref<8x16xbf16, #tpu.memory_space<vmem>>, %arg7: memref<8x1xf32, #tpu.memory_space<vmem>>, %arg8: memref<8x32xbf16, #tpu.memory_space<vmem>>, %arg9: memref<8x1xf32, #tpu.memory_space<vmem>>, %arg10: memref<1x8xbf16, #tpu.memory_space<vmem>>, %arg11: memref<1x1xf32, #tpu.memory_space<vmem>>, %arg12: memref<1x128xbf16, #tpu.memory_space<vmem>>) attributes {dimension_semantics = [#tpu.dimension_semantics<parallel>], iteration_bounds = array<i64: 3>, scalar_prefetch = 0 : i64, scratch_operands = 0 : i64, tpu.core_type = #tpu.core_type<tc>, window_params = [{transform_indices = @transform_0, window_bounds = array<i64: 32, 128>}, {pipeline_mode = #tpu.pipeline_mode<synchronous>, transform_indices = @transform_1, window_bounds = array<i64: 32, 32>}, {pipeline_mode = #tpu.pipeline_mode<synchronous>, transform_indices = @transform_2, window_bounds = array<i64: 32, 1>}, {pipeline_mode = #tpu.pipeline_mode<synchronous>, transform_indices = @transform_3, window_bounds = array<i64: 16, 32>}, {pipeline_mode = #tpu.pipeline_mode<synchronous>, transform_indices = @transform_4, window_bounds = array<i64: 16, 1>}, {pipeline_mode = #tpu.pipeline_mode<synchronous>, transform_indices = @transform_5, window_bounds = array<i64: 8, 16>}, {pipeline_mode = #tpu.pipeline_mode<synchronous>, transform_indices = @transform_6, window_bounds = array<i64: 8, 1>}, {pipeline_mode = #tpu.pipeline_mode<synchronous>, transform_indices = @transform_7, window_bounds = array<i64: 8, 32>}, {pipeline_mode = #tpu.pipeline_mode<synchronous>, transform_indices = @transform_8, window_bounds = array<i64: 8, 1>}, {pipeline_mode = #tpu.pipeline_mode<synchronous>, transform_indices = @transform_9, window_bounds = array<i64: 1, 8>}, {pipeline_mode = #tpu.pipeline_mode<synchronous>, transform_indices = @transform_10, window_bounds = array<i64: 1, 1>}, {transform_indices = @transform_11, window_bounds = array<i64: 1, 128>}]} {
    %c0 = arith.constant 0 : index
    %c0_0 = arith.constant 0 : index
    %0 = vector.load %arg1[%c0, %c0_0] : memref<32x128xbf16, #tpu.memory_space<vmem>>, vector<32x128xbf16>
    %c0_1 = arith.constant 0 : index
    %c0_2 = arith.constant 0 : index
    %1 = vector.load %arg2[%c0_1, %c0_2] : memref<32x32xbf16, #tpu.memory_space<vmem>>, vector<32x32xbf16>
    %cst = arith.constant dense<0.000000e+00> : vector<32x128xf32>
    %2 = tpu.matmul %1, %0, %cst {dimension_numbers = #tpu.dot_dimension_numbers<[1], [0], [0], [1], [0, 0, 1, 1], [], []>} : vector<32x32xbf16>, vector<32x128xbf16>, vector<32x128xf32> -> vector<32x128xf32>
    %c0_3 = arith.constant 0 : index
    %c0_4 = arith.constant 0 : index
    %3 = vector.load %arg3[%c0_3, %c0_4] : memref<32x1xf32, #tpu.memory_space<vmem>>, vector<32x1xf32>
    %4 = vector.broadcast %3 : vector<32x1xf32> to vector<32x128xf32>
    %5 = arith.addf %2, %4 : vector<32x128xf32>
    %cst_5 = arith.constant 0.00999999977 : f32
    %6 = vector.broadcast %cst_5 : f32 to vector<32x128xf32>
    %7 = arith.mulf %6, %5 : vector<32x128xf32>
    %8 = arith.maximumf %5, %7 : vector<32x128xf32>
    %c0_6 = arith.constant 0 : index
    %c0_7 = arith.constant 0 : index
    %9 = vector.load %arg4[%c0_6, %c0_7] : memref<16x32xbf16, #tpu.memory_space<vmem>>, vector<16x32xbf16>
    %10 = arith.truncf %8 : vector<32x128xf32> to vector<32x128xbf16>
    %cst_8 = arith.constant dense<0.000000e+00> : vector<16x128xf32>
    %11 = tpu.matmul %9, %10, %cst_8 {dimension_numbers = #tpu.dot_dimension_numbers<[1], [0], [0], [1], [0, 0, 1, 1], [], []>} : vector<16x32xbf16>, vector<32x128xbf16>, vector<16x128xf32> -> vector<16x128xf32>
    %c0_9 = arith.constant 0 : index
    %c0_10 = arith.constant 0 : index
    %12 = vector.load %arg5[%c0_9, %c0_10] : memref<16x1xf32, #tpu.memory_space<vmem>>, vector<16x1xf32>
    %13 = vector.broadcast %12 : vector<16x1xf32> to vector<16x128xf32>
    %14 = arith.addf %11, %13 : vector<16x128xf32>
    %cst_11 = arith.constant 0.00999999977 : f32
    %15 = vector.broadcast %cst_11 : f32 to vector<16x128xf32>
    %16 = arith.mulf %15, %14 : vector<16x128xf32>
    %17 = arith.maximumf %14, %16 : vector<16x128xf32>
    %c0_12 = arith.constant 0 : index
    %c0_13 = arith.constant 0 : index
    %18 = vector.load %arg6[%c0_12, %c0_13] : memref<8x16xbf16, #tpu.memory_space<vmem>>, vector<8x16xbf16>
    %19 = arith.truncf %17 : vector<16x128xf32> to vector<16x128xbf16>
    %cst_14 = arith.constant dense<0.000000e+00> : vector<8x128xf32>
    %20 = tpu.matmul %18, %19, %cst_14 {dimension_numbers = #tpu.dot_dimension_numbers<[1], [0], [0], [1], [0, 0, 1, 1], [], []>} : vector<8x16xbf16>, vector<16x128xbf16>, vector<8x128xf32> -> vector<8x128xf32>
    %c0_15 = arith.constant 0 : index
    %c0_16 = arith.constant 0 : index
    %21 = vector.load %arg7[%c0_15, %c0_16] : memref<8x1xf32, #tpu.memory_space<vmem>>, vector<8x1xf32>
    %22 = vector.broadcast %21 : vector<8x1xf32> to vector<8x128xf32>
    %23 = arith.addf %20, %22 : vector<8x128xf32>
    %cst_17 = arith.constant 0.00999999977 : f32
    %24 = vector.broadcast %cst_17 : f32 to vector<8x128xf32>
    %25 = arith.mulf %24, %23 : vector<8x128xf32>
    %26 = arith.maximumf %23, %25 : vector<8x128xf32>
    %c0_18 = arith.constant 0 : index
    %c0_19 = arith.constant 0 : index
    %27 = vector.load %arg8[%c0_18, %c0_19] : memref<8x32xbf16, #tpu.memory_space<vmem>>, vector<8x32xbf16>
    %cst_20 = arith.constant dense<0.000000e+00> : vector<8x128xf32>
    %28 = tpu.matmul %27, %0, %cst_20 {dimension_numbers = #tpu.dot_dimension_numbers<[1], [0], [0], [1], [0, 0, 1, 1], [], []>} : vector<8x32xbf16>, vector<32x128xbf16>, vector<8x128xf32> -> vector<8x128xf32>
    %29 = arith.addf %26, %28 : vector<8x128xf32>
    %c0_21 = arith.constant 0 : index
    %c0_22 = arith.constant 0 : index
    %30 = vector.load %arg9[%c0_21, %c0_22] : memref<8x1xf32, #tpu.memory_space<vmem>>, vector<8x1xf32>
    %31 = vector.broadcast %30 : vector<8x1xf32> to vector<8x128xf32>
    %32 = arith.addf %29, %31 : vector<8x128xf32>
    %c0_23 = arith.constant 0 : index
    %c0_24 = arith.constant 0 : index
    %33 = vector.load %arg10[%c0_23, %c0_24] : memref<1x8xbf16, #tpu.memory_space<vmem>>, vector<1x8xbf16>
    %34 = arith.truncf %32 : vector<8x128xf32> to vector<8x128xbf16>
    %cst_25 = arith.constant dense<0.000000e+00> : vector<1x128xf32>
    %35 = tpu.matmul %33, %34, %cst_25 {dimension_numbers = #tpu.dot_dimension_numbers<[1], [0], [0], [1], [0, 0, 1, 1], [], []>} : vector<1x8xbf16>, vector<8x128xbf16>, vector<1x128xf32> -> vector<1x128xf32>
    %c0_26 = arith.constant 0 : index
    %c0_27 = arith.constant 0 : index
    %36 = vector.load %arg11[%c0_26, %c0_27] : memref<1x1xf32, #tpu.memory_space<vmem>>, vector<1x1xf32>
    %37 = vector.broadcast %36 : vector<1x1xf32> to vector<1x128xf32>
    %38 = arith.addf %35, %37 : vector<1x128xf32>
    %cst_28 = arith.constant 0.000000e+00 : f32
    %39 = vector.broadcast %cst_28 : f32 to vector<1x128xf32>
    %40 = arith.subf %39, %38 : vector<1x128xf32>
    %41 = math.exp %40 : vector<1x128xf32>
    %cst_29 = arith.constant 1.000000e+00 : f32
    %42 = vector.broadcast %cst_29 : f32 to vector<1x128xf32>
    %43 = arith.addf %42, %41 : vector<1x128xf32>
    %cst_30 = arith.constant 1.000000e+00 : f32
    %44 = vector.broadcast %cst_30 : f32 to vector<1x128xf32>
    %45 = arith.divf %44, %43 : vector<1x128xf32>
    %46 = arith.truncf %45 : vector<1x128xf32> to vector<1x128xbf16>
    %c0_31 = arith.constant 0 : index
    %c0_32 = arith.constant 0 : index
    %47 = vector.load %arg12[%c0_31, %c0_32] : memref<1x128xbf16, #tpu.memory_space<vmem>>, vector<1x128xbf16>
    tpu.vector_store %arg12[%c0_31, %c0_32], %46 {strides = array<i32>} : memref<1x128xbf16, #tpu.memory_space<vmem>>, vector<1x128xbf16>,
    return
  }
  func.func @transform_0(%arg0: i32) -> (i32, i32) {
    %c0_i32 = arith.constant 0 : i32
    %c0_i32_0 = arith.constant 0 : i32
    return %c0_i32, %arg0 : i32, i32
  }
  func.func @transform_1(%arg0: i32) -> (i32, i32) {
    %c0_i32 = arith.constant 0 : i32
    %c0_i32_0 = arith.constant 0 : i32
    %c0_i32_1 = arith.constant 0 : i32
    return %c0_i32, %c0_i32_0 : i32, i32
  }
  func.func @transform_2(%arg0: i32) -> (i32, i32) {
    %c0_i32 = arith.constant 0 : i32
    %c0_i32_0 = arith.constant 0 : i32
    %c0_i32_1 = arith.constant 0 : i32
    return %c0_i32, %c0_i32_0 : i32, i32
  }
  func.func @transform_3(%arg0: i32) -> (i32, i32) {
    %c0_i32 = arith.constant 0 : i32
    %c0_i32_0 = arith.constant 0 : i32
    %c0_i32_1 = arith.constant 0 : i32
    return %c0_i32, %c0_i32_0 : i32, i32
  }
  func.func @transform_4(%arg0: i32) -> (i32, i32) {
    %c0_i32 = arith.constant 0 : i32
    %c0_i32_0 = arith.constant 0 : i32
    %c0_i32_1 = arith.constant 0 : i32
    return %c0_i32, %c0_i32_0 : i32, i32
  }
  func.func @transform_5(%arg0: i32) -> (i32, i32) {
    %c0_i32 = arith.constant 0 : i32
    %c0_i32_0 = arith.constant 0 : i32
    %c0_i32_1 = arith.constant 0 : i32
    return %c0_i32, %c0_i32_0 : i32, i32
  }
  func.func @transform_6(%arg0: i32) -> (i32, i32) {
    %c0_i32 = arith.constant 0 : i32
    %c0_i32_0 = arith.constant 0 : i32
    %c0_i32_1 = arith.constant 0 : i32
    return %c0_i32, %c0_i32_0 : i32, i32
  }
  func.func @transform_7(%arg0: i32) -> (i32, i32) {
    %c0_i32 = arith.constant 0 : i32
    %c0_i32_0 = arith.constant 0 : i32
    %c0_i32_1 = arith.constant 0 : i32
    return %c0_i32, %c0_i32_0 : i32, i32
  }
  func.func @transform_8(%arg0: i32) -> (i32, i32) {
    %c0_i32 = arith.constant 0 : i32
    %c0_i32_0 = arith.constant 0 : i32
    %c0_i32_1 = arith.constant 0 : i32
    return %c0_i32, %c0_i32_0 : i32, i32
  }
  func.func @transform_9(%arg0: i32) -> (i32, i32) {
    %c0_i32 = arith.constant 0 : i32
    %c0_i32_0 = arith.constant 0 : i32
    %c0_i32_1 = arith.constant 0 : i32
    return %c0_i32, %c0_i32_0 : i32, i32
  }
  func.func @transform_10(%arg0: i32) -> (i32, i32) {
    %c0_i32 = arith.constant 0 : i32
    %c0_i32_0 = arith.constant 0 : i32
    %c0_i32_1 = arith.constant 0 : i32
    return %c0_i32, %c0_i32_0 : i32, i32
  }
  func.func @transform_11(%arg0: i32) -> (i32, i32) {
    %c0_i32 = arith.constant 0 : i32
    %c0_i32_0 = arith.constant 0 : i32
    return %c0_i32, %arg0 : i32, i32
  }
}

</mosaic_0001>

<bundles_post_ra>
// kernel: tpu_custom_call.1
= control target key start
LH: loop header
LB: loop body
LE: loop exit
PB: predicated region body
PF: predicated region fallthrough
CT: control target
= control target key end

     0   :  { %s1292_s0 = inlined_call_operand.vmem [shape: bf16[32,384], index: 0, kind: input, shape index: {}]   ;;  %s1293_s1 = inlined_call_operand.vmem [shape: bf16[32,32], index: 1, kind: input, shape index: {}]   ;;  %s1294_s2 = inlined_call_operand.vmem [shape: f32[32,1], index: 2, kind: input, shape index: {}]   ;;  %s1295_s3 = inlined_call_operand.vmem [shape: bf16[16,32], index: 3, kind: input, shape index: {}]   ;;  %s1296_s4 = inlined_call_operand.vmem [shape: f32[16,1], index: 4, kind: input, shape index: {}]   ;;  %s1297_s5 = inlined_call_operand.vmem [shape: bf16[8,16], index: 5, kind: input, shape index: {}]   ;;  %s1298_s6 = inlined_call_operand.vmem [shape: f32[8,1], index: 6, kind: input, shape index: {}]   ;;  %s1299_s7 = inlined_call_operand.vmem [shape: bf16[8,32], index: 7, kind: input, shape index: {}]   ;;  %s1300_s8 = inlined_call_operand.vmem [shape: f32[8,1], index: 8, kind: input, shape index: {}]   ;;  %s1301_s9 = inlined_call_operand.vmem [shape: bf16[1,8], index: 9, kind: input, shape index: {}]   ;;  %s1302_s10 = inlined_call_operand.<no memory space> [shape: f32[1,1], index: 10, kind: input, shape index: {}]   ;;  %s1303_s11 = inlined_call_operand.hbm [shape: bf16[1,384], index: 11, kind: output, shape index: {}]  }
   0x1   :  { %v16_v0 = vstv %s1302_s10 }
   0x2   :  { %17 = vst [vmem:[#allocation2] sm:$0x1] %v16_v0 }
   0x3   :  { %18 = vsyncpa [#allocation5], 0 }
   0x4   :  { %20 = vsyncpa [#allocation5 + $0x1], 0  ;;  %s1135_s19 = smov 0   ;;  %s1137_s20 = smov 0  }
   0x5   :  { %s1139_s21 = smov 0   ;;  %s1141_s22 = smov 0  }
   0x6 LB: > { %s879_s10 = sadd.s32 4294967295, %s1066_s22   ;;  %s880_s23 = sadd.s32 4294967294, %s1066_s22   ;;  %s1066_s22 = sphi %s1141_s22, %s1309_s22   ;;  %s1062_s21 = sphi %s1139_s21, %s1308_s21   ;;  %s1058_s20 = sphi %s1137_s20, %s1307_s20   ;;  %s1054_s19 = sphi %s1135_s19, %s1306_s19  }
   0x7   : > { %s1158_s24 = sadd.s32 1, %s1066_s22   ;;  %s33_s25 = sadd.s32 1, %s1062_s21 }
   0x8   : > { %s30_s26 = ssub.s32 %s1066_s22, %s1158_s24  ;;  %p40_p0 = scmp.ne.s32.totalorder %s1062_s21, %s1058_s20 }
   0x9   : > { %p31_p1 = scmp.eq.s32.totalorder %s30_s26, 0  ;;  %p41_p2 = scmp.eq.s32.totalorder %s1066_s22, 0 }
   0xa   : > { %p280_p3 = scmp.eq.s32.totalorder %s879_s10, 2  ;;  %p285_p4 = scmp.ne.s32.totalorder %s1058_s20, %s1054_s19 }
   0xb   : > { %s1171_s27 = scalar_select %p31_p1, %s1062_s21, %s33_s25  }
   0xc   : > { %p42_p5 = por %p41_p2, %p40_p0  ;;  %p1173_p6 = por %p280_p3, %p40_p0 }
   0xd   : > { %p286_p7 = scmp.eq.s32.totalorder %s880_s23, 2  ;;  %p882_p9 = scmp.ge.s32.totalorder %s1066_s22, 3 }
   0xf   : > { %p1177_p8 = por %p286_p7, %p285_p4  ;;  %332 = sbr.rel (%p882_p9) target bundleno = 29 (0x1d), region = 56 }
  0x16   : > { %335 = sbr.rel (!%p42_p5) target bundleno = 29 (0x1d), region = 60  ;;  %s337_s30 = sand.u32 (%p42_p5), 1, %s1062_s21  }
  0x17   : > { %s884_s12 = sshll.u32 (%p42_p5), %s1066_s22, 2  ;;  %s883_s13 = sshll.u32 (%p42_p5), %s337_s30, 4 }
  0x18   : > { %s341_s16 = scalar_lea.vmem (%p42_p5), %s1292_s0, %s884_s12  ;;  %s339_s17 = scalar_lea.vmem (%p42_p5), [#allocation3], %s883_s13 }
  0x19   : > { %v357_v1 = vld [vmem:[%s341_s16] sm:$0xf] (%p42_p5)  ;;  %v359_v2 = vld [vmem:[%s341_s16 + $0xc] sm:$0xf] (%p42_p5)  ;;  %v361_v3 = vld [vmem:[%s341_s16 + $0x18] sm:$0xf] (%p42_p5) }
  0x1a   : > { %358 = vst [vmem:[%s339_s17] sm:$0xf] (%p42_p5), %v357_v1  ;;  %360 = vst [vmem:[%s339_s17 + $0x4] sm:$0xf] (%p42_p5), %v359_v2  ;;  %v363_v4 = vld [vmem:[%s341_s16 + $0x24] sm:$0xf] (%p42_p5) }
  0x1b   : > { %362 = vst [vmem:[%s339_s17 + $0x8] sm:$0xf] (%p42_p5), %v361_v3  ;;  %364 = vst [vmem:[%s339_s17 + $0xc] sm:$0xf] (%p42_p5), %v363_v4 }
  0x1d PF: > { %p885_p10 = scmp.ge.s32.totalorder %s1066_s22, 1  ;;  %p394_p11 = scmp.lt.s32.totalorder %s1066_s22, 4 }
  0x1f   : > { %p395_p12 = pnand %p885_p10, %p394_p11 }
  0x20   : > { %s1190_s18 = sand.u32 (!%p395_p12), 1, %s1058_s20   ;;  %v997_v5 = vld [vmem:[%s1293_s1] sm:$0xff] (!%p395_p12)   ;;  %vm494_vm0 = vcmask (!%p395_p12), 261120   ;;  %v1068_v8 = vmov (!%p395_p12), 0   ;;  %v449_v10 = vld [vmem:[%s1294_s2 + $0x8] sm:$0xff] (!%p395_p12)  ;;  %v450_v11 = vld [vmem:[%s1294_s2 + $0x10] sm:$0xff] (!%p395_p12) }
  0x21   : > { %398 = sbr.rel (%p395_p12) target bundleno = 986 (0x3da), region = 101  ;;  %s886_s26 = sshll.u32 (!%p395_p12), %s1190_s18, 4  ;;  %919 = vmatprep.mubr.msk.bf16.mxu0 (!%p395_p12), %vm494_vm0, %v997_v5  ;;  %v448_v6 = vld [vmem:[%s1294_s2] sm:$0xff] (!%p395_p12)  ;;  %993 = vset.pattern.permute.xlu0 (!%p395_p12), %v1068_v8  ;;  %v451_v12 = vld [vmem:[%s1294_s2 + $0x18] sm:$0xff] (!%p395_p12)  ;;  %v998_v13 = vld [vmem:[%s1293_s1 + $0x8] sm:$0xff] (!%p395_p12)   ;;  %v1069_v19 = vmov (!%p395_p12), 0.0  }
  0x22   : > { %s403_s13 = scalar_lea.vmem (!%p395_p12), [#allocation3], %s886_s26  ;;  %994 = vset.pattern.permute.xlu1 (!%p395_p12), %v1068_v8  ;;  %454 = vperm.xlu0 (!%p395_p12), %993, %v448_v6   ;;  %v562_v14 = vld [vmem:[%s1296_s4] sm:$0xff] (!%p395_p12)  ;;  %v563_v15 = vld [vmem:[%s1296_s4 + $0x8] sm:$0xff] (!%p395_p12)  ;;  %vm1070_vm1 = vmmov (!%p395_p12), 0   ;;  %vm635_vm2 = vcmask (!%p395_p12), 130048   ;;  %vm749_vm3 = vcmask (!%p395_p12), 1043456  }
  0x23   : > { %v995_v7 = vld [vmem:[%s403_s13] sm:$0xff] (!%p395_p12)   ;;  %v996_v9 = vld [vmem:[%s403_s13 + $0x8] sm:$0xff] (!%p395_p12)   ;;  %464 = vperm.xlu1 (!%p395_p12), %994, %v450_v11   ;;  %923 = vmatprep.subr.bf16.mxu1 (!%p395_p12), %v1069_v19  ;;  %vm745_vm4 = vcmask (!%p395_p12), 64512   ;;  %vm800_vm5 = vcmask (!%p395_p12), 1040384   ;;  %vm801_vm6 = vsmask.f32 (!%p395_p12), 256 }
  0x24   : > { %915 = vmatprep.subr.bf16.mxu0 (!%p395_p12), %v995_v7  ;;  %v629_v16 = vld [vmem:[%s1298_s6] sm:$0xff] (!%p395_p12)  ;;  %927 = vmatprep.mubr.msk.bf16.mxu1 (!%p395_p12), %vm1070_vm1, %v1069_v19  ;;  %s898_s23 = sshll.u32 (!%p395_p12), %s879_s10, 4  ;;  %s438_s25 = scalar_lea.vmem (!%p395_p12), [#allocation4], %s1190_s18  ;;  %vm802_vm7 = vmand (!%p395_p12), %vm800_vm5, %vm801_vm6 }
  0x25   : > { %916 = vmatpush3.bf16.msra.mxu0 (!%p395_p12), %v995_v7  ;;  %v726_v17 = vld [vmem:[%s1300_s8] sm:$0xff] (!%p395_p12)  ;;  %s819_s26 = sshll.u32 (!%p395_p12), %s438_s25, 4  ;;  %s1249_s13 = scalar_lea.hbm (!%p395_p12), %s1303_s11, %s898_s23  ;;  %s1251_s26 = int_to_ptr.vmem [resolvable:$true] %s819_s26 }
  0x26   : > { %917 = vmatprep.subr.bf16.mxu0 (!%p395_p12), %v996_v9  ;;  %459 = vperm.xlu0 (!%p395_p12), %993, %v449_v10   ;;  %v735_v18 = vld [vmem:[#allocation2] sm:$0x1] (!%p395_p12)  ;;  %s807_s14 = scalar_lea.sflag (!%p395_p12), [#allocation5], %s1190_s18  ;;  %s1004_s10 = scalar_lea.vmem (!%p395_p12), %s1251_s26, 16 }
  0x27   : > { %469 = vperm.xlu1 (!%p395_p12), %994, %v451_v12   ;;  %v999_v42 = vld [vmem:[%s1295_s3] sm:$0xff] (!%p395_p12)   ;;  %v741_v12 = vlaneseq (!%p395_p12)  ;;  %p1005_p13 = scmp.ne.s32.totalorder (!%p395_p12), %s1251_s26, %s1004_s10  ;;  %s1071_s15 = smov (!%p395_p12), [#allocation4]  }
  0x28   : > { %v681_v43 = vld [vmem:[%s1299_s7] sm:$0xf]  ;;  %s1008_s16 = sshll.u32 %s1071_s15, 4  ;;  %s1009_s16 = int_to_ptr.vmem [resolvable:$false] %s1008_s16 }
  0x29   : > { %918 = vmatpush3.bf16.msra.mxu0 %v996_v9  ;;  %v627_v57 = vld [vmem:[%s1297_s5] sm:$0xf]  ;;  %p1006_p0 = pnand %p1005_p13, %p1173_p6  ;;  %s1010_s17 = scalar_lea.vmem %s1009_s16, 32 }
  0x2a   : > { %566 = vperm.xlu0 %993, %v562_v14   ;;  %931 = vmatprep.subr.bf16.mxu0 %v1069_v19  ;;  %v733_v11 = vld [vmem:[%s1301_s9] sm:$0x1]  ;;  %p1011_p2 = scmp.lt.s32.totalorder %s1251_s26, %s1009_s16  ;;  %p1012_p3 = scmp.lt.s32.totalorder %s1010_s17, %s1004_s10 }
  0x2b   : > { %571 = vperm.xlu1 %994, %v563_v15   ;;  %p1007_p1 = pneg %p1006_p0 }
  0x2c   : > { %920 = vmatmul.mubr.msk.bf16.vlgmr.msra.gmra.mrb[0].mxu0 %vm494_vm0, %v998_v13  ;;  %v742_v13 = vshrl.u32 %v741_v12, 7  ;;  %p1013_p4 = por %p1012_p3, %p1011_p2 }
  0x2d   : > { %933 = vmatprep.mubr.msk.bf16.mxu0 %vm1070_vm1, %v1069_v19 }
  0x2e   : > { %632 = vperm.xlu0 %993, %v629_v16   ;;  %v743_v14 = vsub.s32 0, %v742_v13  ;;  %p1014_p5 = pnand %p1013_p4, %p1007_p1 }
  0x2f   : > { %729 = vperm.xlu1 %994, %v726_v17  }
  0x32   : > { %738 = vperm.xlu0 %993, %v735_v18  }
  0xa1   : > { %v455_v21 = vpop.permute.xlu0 %454 }
  0xa2   : > { %v465_v20 = vpop.permute.xlu1 %464 }
  0xa5   : > { %v460_v28 = vpop.permute.xlu0 %459 }
  0xa6   : > { %v470_v25 = vpop.permute.xlu1 %469 }
  0xa9   : > { %v567_v44 = vpop.permute.xlu0 %566 }
  0xaa   : > { %v572_v48 = vpop.permute.xlu1 %571 }
  0xad   : > { %v633_v62 = vpop.permute.xlu0 %632 }
  0xb1   : > { %v739_v15 = vpop.permute.xlu0 %738 }
  0xb2   : > { %v744_v16 = vrot.slane %v739_v15, %v743_v14 }
  0xff   : > { %v921_v22 = vpop.f32.mrb[0].mxu0 }
 0x100   : > { %v544_v23 = vadd.f32 %v921_v22, %v465_v20  ;;  %v535_v24 = vpop.f32.mrb[1].mxu0 }
 0x101   : > { %v536_v26 = vadd.f32 %v535_v24, %v455_v21  ;;  %v922_v27 = vpop.f32.mrb[2].mxu0 }
 0x102   : > { %v552_v29 = vmul.f32 0.01, %v544_v23  ;;  %v547_v30 = vadd.f32 %v922_v27, %v470_v25  ;;  %v538_v31 = vpop.f32.mrb[3].mxu0  ;;  %v803_v27 = vld [vmem:[%s438_s25] sm:$0x1] }
 0x103   : > { %v550_v32 = vmul.f32 0.01, %v536_v26  ;;  %v539_v33 = vadd.f32 %v538_v31, %v460_v28 }
 0x104   : > { %v553_v34 = vmul.f32 0.01, %v547_v30  ;;  %v556_v36 = vmax.f32 %v544_v23, %v552_v29 }
 0x105   : > { %v551_v35 = vmul.f32 0.01, %v539_v33  ;;  %v554_v38 = vmax.f32 %v536_v26, %v550_v32 }
 0x106   : > { %v557_v37 = vmax.f32 %v547_v30, %v553_v34 }
 0x107   : > { %v555_v39 = vmax.f32 %v539_v33, %v551_v35 }
 0x108   : > { %v561_v40 = vpack.c.bf16 %v557_v37, %v556_v36 }
 0x109   : > { %v560_v41 = vpack.c.bf16 %v555_v39, %v554_v38 }
 0x10b   : > { %924 = vmatpush3.bf16.msra.mxu1 %v560_v41 }
 0x10c   : > { %925 = vmatprep.subr.bf16.mxu1 %v1069_v19 }
 0x10f   : > { %926 = vmatpush3.bf16.msra.mxu1 %v561_v40 }
 0x110   : > { %937 = vmatprep.subr.bf16.mxu1 %v1069_v19 }
 0x112   : > { %928 = vmatmul.mubr.msk.bf16.vlgmr.msra.gmra.mrb[0].mxu1 %vm494_vm0, %v999_v42 }
 0x113   : > { %938 = vmatpush3.bf16.msra.mxu1 %v995_v7  ;;  %941 = vmatprep.mubr.msk.bf16.mxu1 %vm1070_vm1, %v1069_v19  ;;  %v730_v7 = vpop.permute.xlu1 %729 }
 0x114   : > { %939 = vmatprep.subr.bf16.mxu1 %v1069_v19 }
 0x117   : > { %940 = vmatpush3.bf16.msra.mxu1 %v996_v9 }
 0x11a   : > { %942 = vmatmul.mubr.msk.bf16.vlgmr.msra.gmra.mrb[4].mxu1 %vm494_vm0, %v681_v43 }
 0x1e5   : > { %v616_v45 = vpop.f32.mrb[0].mxu1 }
 0x1e6   : > { %v617_v46 = vadd.f32 %v616_v45, %v567_v44  ;;  %v929_v47 = vpop.f32.mrb[1].mxu1 }
 0x1e7   : > { %v619_v49 = vpop.f32.mrb[2].mxu1 }
 0x1e8   : > { %v623_v50 = vmul.f32 0.01, %v617_v46  ;;  %v620_v51 = vadd.f32 %v619_v49, %v572_v48  ;;  %v930_v52 = vpop.f32.mrb[3].mxu1 }
 0x1ea   : > { %v624_v53 = vmul.f32 0.01, %v620_v51  ;;  %v625_v54 = vmax.f32 %v617_v46, %v623_v50 }
 0x1ec   : > { %v626_v55 = vmax.f32 %v620_v51, %v624_v53 }
 0x1ed   : > { %v719_v58 = vpop.f32.mrb[4].mxu1 }
 0x1ee   : > { %v628_v56 = vpack.c.bf16 %v626_v55, %v625_v54  ;;  %v943_v59 = vpop.f32.mrb[5].mxu1 }
 0x1ef   : > { %v722_v60 = vpop.f32.mrb[6].mxu1 }
 0x1f0   : > { %932 = vmatpush3.bf16.msra.mxu0 %v628_v56  ;;  %v944_v61 = vpop.f32.mrb[7].mxu1 }
 0x1f1   : > { %945 = vmatprep.subr.bf16.mxu0 %v1069_v19 }
 0x1f3   : > { %934 = vmatmul.mubr.msk.bf16.vlgmr.msra.gmra.mrb[4].mxu0 %vm635_vm2, %v627_v57 }
 0x1f4   : > { %947 = vmatprep.mubr.msk.bf16.mxu0 %vm1070_vm1, %v1069_v19 }
 0x2c6   : > { %v673_v63 = vpop.f32.mrb[4].mxu0 }
 0x2c7   : > { %v674_v0 = vadd.f32 %v673_v63, %v633_v62  ;;  %v935_v1 = vpop.f32.mrb[5].mxu0 }
 0x2c8   : > { %v676_v2 = vpop.f32.mrb[6].mxu0 }
 0x2c9   : > { %v679_v3 = vmul.f32 0.01, %v674_v0  ;;  %v936_v4 = vpop.f32.mrb[7].mxu0 }
 0x2cb   : > { %v680_v5 = vmax.f32 %v674_v0, %v679_v3 }
 0x2cd   : > { %v725_v6 = vadd.f32 %v719_v58, %v680_v5 }
 0x2cf   : > { %v732_v8 = vadd.f32 %v730_v7, %v725_v6 }
 0x2d1   : > { %v734_v9 = vpack.c.bf16 %v732_v8, %v732_v8 }
 0x2d3   : > { %v751_v10 = vsel %vm749_vm3, %v734_v9, 0 }
 0x2d4   : > { %946 = vmatpush3.bf16.msra.mxu0 %v751_v10 }
 0x2d7   : > { %948 = vmatmul.mubr.msk.bf16.vlgmr.msra.gmra.mrb[8].mxu0 %vm745_vm4, %v733_v11 }
 0x3aa   : > { %v787_v17 = vpop.f32.mrb[8].mxu0 }
 0x3ab   : > { %v788_v18 = vadd.f32 %v787_v17, %v744_v16  ;;  %v949_v19 = vpop.f32.mrb[9].mxu0 }
 0x3ac   : > { %v790_v20 = vpop.f32.mrb[10].mxu0 }
 0x3ad   : > { %v793_v21 = vsub.f32 0.0, %v788_v18  ;;  %v950_v22 = vpop.f32.mrb[11].mxu0 }
 0x3af   : > { %v794_v23 = vmul.f32 1.442695, %v793_v21 }
 0x3b1   : > { %1000 = vpow2.f32 %v794_v23 }
 0x3bb   : > { %v1001_v24 = vpop.eup %1000 }
 0x3bc   : > { %v796_v25 = vadd.f32 1.0, %v1001_v24 }
 0x3be   : > { %1002 = vrcp.f32 %v796_v25 }
 0x3c8   : > { %v1003_v26 = vpop.eup %1002 }
 0x3c9   : > { %v799_v28 = vpack.c.bf16 %v1003_v26, %v1003_v26 }
 0x3cb   : > { %v804_v29 = vsel %vm802_vm7, %v799_v28, %v803_v27 }
 0x3cc   : > { %805 = vst [vmem:[%s438_s25] sm:$0x1] %v804_v29 }
 0x3cd   : > { %1017 = shalt.err (!%p1014_p5)
}
 0x3ce   : > { %s1018_s18 = scalar_lea.hbm %s1249_s13, 16  ;;  %s1022_s30 = scalar_lea.hbm %s1303_s11, 48 }
 0x3cf   : > { %p1019_p7 = scmp.ne.s32.totalorder %s1249_s13, %s1018_s18  ;;  %p1023_p11 = scmp.lt.u32.totalorder %s1249_s13, %s1303_s11 }
 0x3d0   : > { %p1024_p12 = scmp.lt.u32.totalorder %s1022_s30, %s1018_s18  ;;  %p1026_p0 = scmp.lt.u32.totalorder %s1018_s18, %s1249_s13 }
 0x3d1   : > { %p1020_p9 = pnand %p1019_p7, %p1173_p6 }
 0x3d2   : > { %p1025_p13 = por %p1024_p12, %p1023_p11 }
 0x3d3   : > { %p1021_p10 = pneg %p1020_p9 }
 0x3d4   : > { %p1027_p1 = por %p1026_p0, %p1025_p13 }
 0x3d6   : > { %p1028_p2 = pnand %p1027_p1, %p1021_p10 }
 0x3d8   : > { %1031 = shalt.err (!%p1028_p2)
}
 0x3d9   : > { %951 = dma.vmem_to_hbm [thread:$0]  (%p1173_p6), %s1251_s26, 16, %s1249_s13, %s807_s14  }
 0x3da PF: > { %p957_p3 = scmp.ge.s32.totalorder %s1066_s22, 2  ;;  %s831_s10 = sand.u32 1, %s1054_s19  }
 0x3db   : > { %s832_s16 = scalar_lea.sflag [#allocation5], %s831_s10 }
 0x3dc   : > { %p954_p4 = pnand %p957_p3, %p1177_p8 }
 0x3de   : > { %1049 = dma.done.wait (!%p954_p4), %s832_s16, 16  }
 0x3df   : > { %1051 = vsyncadd (!%p954_p4), %s832_s16, 4294967280  ;;  %p23_p5 = scmp.ge.s32.totalorder %s1158_s24, 5   ;;  %s1306_s19 = smov %s1058_s20 }
 0x3e0   : > { %s1307_s20 = smov %s1062_s21  ;;  %s1308_s21 = smov %s1171_s27 }
 0x3e1   : > { %s1309_s22 = smov %s1158_s24  ;;  %25 = sbr.rel (!%p23_p5) target bundleno = 6 (0x6), region = 145 }
 0x3e8   :  { %836 = vsyncpa [#allocation5], 1 }
 0x3e9   :  { %838 = vsyncpa [#allocation5 + $0x1], 1 }

</bundles_post_ra>
